<compile_context>
chip_gen: v6e
topology: v6e:2x2x1
jax: 0.10.0
libtpu: 0.0.40
codegen_flags: <defaults>
</compile_context>

<pallas_src>
import functools

import jax
import jax.numpy as jnp
from jax import lax
from jax.experimental import pallas as pl
from jax.experimental.pallas import tpu as pltpu


def _lsr_kernel(x_ref, t_ref, out_ref, acc_ref, *, epsilon: float, n_total: int, tile_n: int):
    i = pl.program_id(0)
    n_tiles = pl.num_programs(0)

    @pl.when(i == 0)
    def _init():
        acc_ref[...] = jnp.zeros_like(acc_ref)

    x = x_ref[...].astype(jnp.float32)                        # (TN, C)
    tn, c = x.shape

    # numerically stable pieces of log-softmax over the class (lane) axis
    m = jnp.max(x, axis=1, keepdims=True)                     # (TN, 1)
    z = x - m                                                 # (TN, C)
    lse = jnp.log(jnp.sum(jnp.exp(z), axis=1, keepdims=True)) # (TN, 1)
    sum_z = jnp.sum(z, axis=1, keepdims=True)                 # (TN, 1)

    # gather z at the target class: masked where + lane-reduce
    class_ids = lax.broadcasted_iota(jnp.int32, (tn, c), 1)   # (TN, C)
    tgt = t_ref[...]                                          # (TN, 1) int32
    z_tgt = jnp.sum(jnp.where(class_ids == tgt, z, jnp.float32(0.0)),
                    axis=1, keepdims=True)                    # (TN, 1)

    # per-row smoothed CE:
    #   -((1-eps)*logp[tgt] + (eps/C)*sum_c logp) = lse - (1-eps)*z_tgt - (eps/C)*sum_z
    per_row = (lse
               - jnp.float32(1.0 - epsilon) * z_tgt
               - jnp.float32(epsilon / c) * sum_z)            # (TN, 1)

    # mask rows that are padding (global row index >= true N)
    row_ids = i * tile_n + lax.broadcasted_iota(jnp.int32, (tn, 1), 0)
    per_row = jnp.where(row_ids < n_total, per_row, jnp.float32(0.0))

    acc_ref[...] += jnp.sum(per_row, axis=0, keepdims=True)   # (1, 1)

    @pl.when(i == n_tiles - 1)
    def _finalize():
        out_ref[...] = acc_ref[...] / jnp.float32(n_total)


def _choose_tile_n(n: int, c: int, itemsize: int) -> int:
    # Target <= ~8 MiB per pipelined logits buffer (2 buffers -> <= ~16 MiB),
    # safe under v7x's 64 MiB physical / 32 MiB scoped VMEM; cap rows at 1024.
    budget = 8 * 1024 * 1024
    tn = max(8, min(1024, budget // max(1, c * itemsize)))
    tn = max(8, (tn // 8) * 8)          # sublane multiple
    n_up8 = ((n + 7) // 8) * 8
    return min(tn, n_up8)


def lsr_loss(inputs: jax.Array, targets: jax.Array, epsilon: float = 0.1,
             tile_n: int | None = None) -> jax.Array:
    """inputs: (N, C) float logits (f32 or bf16); targets: (N,) int class ids; scalar f32 loss."""
    n, c = inputs.shape
    itemsize = jnp.dtype(inputs.dtype).itemsize
    tn = tile_n if tile_n is not None else _choose_tile_n(n, c, itemsize)
    assert tn % 8 == 0, "tile_n must be a multiple of 8"

    n_tiles = pl.cdiv(n, tn)
    n_pad = n_tiles * tn
    if n_pad != n:
        inputs = jnp.pad(inputs, ((0, n_pad - n), (0, 0)))
        targets = jnp.pad(targets, ((0, n_pad - n),))
    t2d = targets.astype(jnp.int32).reshape(n_pad, 1)

    kernel = functools.partial(_lsr_kernel, epsilon=epsilon, n_total=n, tile_n=tn)

    out = pl.pallas_call(
        kernel,
        out_shape=jax.ShapeDtypeStruct((1, 1), jnp.float32),
        grid_spec=pltpu.PrefetchScalarGridSpec(
            num_scalar_prefetch=0,
            grid=(n_tiles,),
            in_specs=[
                pl.BlockSpec((tn, c), lambda i: (i, 0)),
                pl.BlockSpec((tn, 1), lambda i: (i, 0)),
            ],
            out_specs=pl.BlockSpec((1, 1), lambda i: (0, 0)),
            scratch_shapes=[pltpu.VMEM((1, 1), jnp.float32)],
        ),
        compiler_params=pltpu.CompilerParams(
            dimension_semantics=("arbitrary",),
            vmem_limit_bytes=32 * 1024 * 1024,
        ),
    )(inputs, t2d)
    return out[0, 0]


def _lsr_ref(inputs, targets, epsilon=0.1):
    # pure-JAX reference mirroring the PyTorch module
    n, c = inputs.shape
    logp = jax.nn.log_softmax(inputs.astype(jnp.float32), axis=1)
    onehot = jax.nn.one_hot(targets, c, dtype=jnp.float32) * (1.0 - epsilon) + epsilon / c
    return jnp.mean(-jnp.sum(onehot * logp, axis=1))


if __name__ == "__main__":
    key = jax.random.PRNGKey(0)

    # Case 1: small, single tile (batch=8, classes=32)
    k1, k2, key = jax.random.split(key, 3)
    N1, C1 = 8, 32
    x1 = jax.random.normal(k1, (N1, C1), dtype=jnp.float32)
    t1 = jax.random.randint(k2, (N1,), 0, C1, dtype=jnp.int32)
    loss1 = lsr_loss(x1, t1, epsilon=0.1)
    jax.block_until_ready(loss1)
    ref1 = _lsr_ref(x1, t1, epsilon=0.1)
    assert jnp.allclose(loss1, ref1, atol=1e-5, rtol=1e-5), (loss1, ref1)

    # Case 2: multi-tile with a ragged last tile (exercises accumulator + row masking)
    k3, k4 = jax.random.split(key)
    N2, C2 = 50, 32
    x2 = jax.random.normal(k3, (N2, C2), dtype=jnp.float32)
    t2 = jax.random.randint(k4, (N2,), 0, C2, dtype=jnp.int32)
    loss2 = lsr_loss(x2, t2, epsilon=0.2, tile_n=16)
    jax.block_until_ready(loss2)
    ref2 = _lsr_ref(x2, t2, epsilon=0.2)
    assert jnp.allclose(loss2, ref2, atol=1e-5, rtol=1e-5), (loss2, ref2)

    print("KERNEL_OK")
</pallas_src>

<mosaic_0001>
module attributes {stable_mosaic.version = 11 : i64} {
  func.func @_lsr_kernel(%arg0: i32, %arg1: memref<8x32xf32, #tpu.memory_space<vmem>>, %arg2: memref<8x1xi32, #tpu.memory_space<vmem>>, %arg3: memref<1x1xf32, #tpu.memory_space<vmem>>, %arg4: memref<1x1xf32, #tpu.memory_space<vmem>>) attributes {dimension_semantics = [#tpu.dimension_semantics<arbitrary>], iteration_bounds = array<i64: 1>, scalar_prefetch = 0 : i64, scratch_operands = 1 : i64, tpu.core_type = #tpu.core_type<tc>, window_params = [{transform_indices = @transform_0, window_bounds = array<i64: 8, 32>}, {transform_indices = @transform_1, window_bounds = array<i64: 8, 1>}, {pipeline_mode = #tpu.pipeline_mode<synchronous>, transform_indices = @transform_2, window_bounds = array<i64: 1, 1>}]} {
    %c0_i32 = arith.constant 0 : i32
    %0 = arith.cmpi eq, %arg0, %c0_i32 : i32
    %1 = arith.extui %0 : i1 to i32
    %c0_i32_0 = arith.constant 0 : i32
    %2 = arith.cmpi ne, %1, %c0_i32_0 : i32
    scf.if %2 {
      %cst_19 = arith.constant 0.000000e+00 : f32
      %44 = vector.broadcast %cst_19 : f32 to vector<1x1xf32>
      %c0_20 = arith.constant 0 : index
      %c0_21 = arith.constant 0 : index
      %45 = vector.load %arg4[%c0_20, %c0_21] : memref<1x1xf32, #tpu.memory_space<vmem>>, vector<1x1xf32>
      tpu.vector_store %arg4[%c0_20, %c0_21], %44 {strides = array<i32>} : memref<1x1xf32, #tpu.memory_space<vmem>>, vector<1x1xf32>,
    } else {
    }
    %c0 = arith.constant 0 : index
    %c0_1 = arith.constant 0 : index
    %3 = vector.load %arg1[%c0, %c0_1] : memref<8x32xf32, #tpu.memory_space<vmem>>, vector<8x32xf32>
    %cst = arith.constant dense<0xFF800000> : vector<8xf32>
    %4 = vector.multi_reduction <maximumf>, %3, %cst [1] : vector<8x32xf32> to vector<8xf32>
    %5 = vector.shape_cast %4 : vector<8xf32> to vector<8x1xf32>
    %6 = vector.broadcast %5 : vector<8x1xf32> to vector<8x32xf32>
    %7 = arith.subf %3, %6 : vector<8x32xf32>
    %8 = math.exp %7 : vector<8x32xf32>
    %cst_2 = arith.constant dense<0.000000e+00> : vector<8xf32>
    %9 = vector.multi_reduction <add>, %8, %cst_2 [1] : vector<8x32xf32> to vector<8xf32>
    %10 = vector.shape_cast %9 : vector<8xf32> to vector<8x1xf32>
    %11 = math.log %10 : vector<8x1xf32>
    %cst_3 = arith.constant dense<0.000000e+00> : vector<8xf32>
    %12 = vector.multi_reduction <add>, %7, %cst_3 [1] : vector<8x32xf32> to vector<8xf32>
    %13 = vector.shape_cast %12 : vector<8xf32> to vector<8x1xf32>
    %14 = tpu.iota {dimensions = array<i32: 1>} : vector<8x32xi32>
    %c0_4 = arith.constant 0 : index
    %c0_5 = arith.constant 0 : index
    %15 = vector.load %arg2[%c0_4, %c0_5] : memref<8x1xi32, #tpu.memory_space<vmem>>, vector<8x1xi32>
    %16 = vector.broadcast %15 : vector<8x1xi32> to vector<8x32xi32>
    %17 = arith.cmpi eq, %14, %16 : vector<8x32xi32>
    %cst_6 = arith.constant 0.000000e+00 : f32
    %18 = vector.broadcast %cst_6 : f32 to vector<8x32xf32>
    %19 = arith.select %17, %7, %18 : vector<8x32xi1>, vector<8x32xf32>
    %cst_7 = arith.constant dense<0.000000e+00> : vector<8xf32>
    %20 = vector.multi_reduction <add>, %19, %cst_7 [1] : vector<8x32xf32> to vector<8xf32>
    %21 = vector.shape_cast %20 : vector<8xf32> to vector<8x1xf32>
    %cst_8 = arith.constant 0.899999976 : f32
    %22 = vector.broadcast %cst_8 : f32 to vector<8x1xf32>
    %23 = arith.mulf %22, %21 : vector<8x1xf32>
    %24 = arith.subf %11, %23 : vector<8x1xf32>
    %cst_9 = arith.constant 3.125000e-03 : f32
    %25 = vector.broadcast %cst_9 : f32 to vector<8x1xf32>
    %26 = arith.mulf %25, %13 : vector<8x1xf32>
    %27 = arith.subf %24, %26 : vector<8x1xf32>
    %c8_i32 = arith.constant 8 : i32
    %28 = arith.muli %arg0, %c8_i32 : i32
    %29 = tpu.iota {dimensions = array<i32: 0>} : vector<8x1xi32>
    %30 = vector.broadcast %28 : i32 to vector<8x1xi32>
    %31 = arith.addi %30, %29 : vector<8x1xi32>
    %c8_i32_10 = arith.constant 8 : i32
    %32 = vector.broadcast %c8_i32_10 : i32 to vector<8x1xi32>
    %33 = arith.cmpi slt, %31, %32 : vector<8x1xi32>
    %cst_11 = arith.constant 0.000000e+00 : f32
    %34 = vector.broadcast %cst_11 : f32 to vector<8x1xf32>
    %35 = arith.select %33, %27, %34 : vector<8x1xi1>, vector<8x1xf32>
    %c0_12 = arith.constant 0 : index
    %c0_13 = arith.constant 0 : index
    %36 = vector.load %arg4[%c0_12, %c0_13] : memref<1x1xf32, #tpu.memory_space<vmem>>, vector<1x1xf32>
    %cst_14 = arith.constant dense<0.000000e+00> : vector<1xf32>
    %37 = vector.multi_reduction <add>, %35, %cst_14 [0] : vector<8x1xf32> to vector<1xf32>
    %38 = vector.shape_cast %37 : vector<1xf32> to vector<1x1xf32>
    %39 = arith.addf %36, %38 : vector<1x1xf32>
    %c0_15 = arith.constant 0 : index
    %c0_16 = arith.constant 0 : index
    %40 = vector.load %arg4[%c0_15, %c0_16] : memref<1x1xf32, #tpu.memory_space<vmem>>, vector<1x1xf32>
    tpu.vector_store %arg4[%c0_15, %c0_16], %39 {strides = array<i32>} : memref<1x1xf32, #tpu.memory_space<vmem>>, vector<1x1xf32>,
    %c0_i32_17 = arith.constant 0 : i32
    %41 = arith.cmpi eq, %arg0, %c0_i32_17 : i32
    %42 = arith.extui %41 : i1 to i32
    %c0_i32_18 = arith.constant 0 : i32
    %43 = arith.cmpi ne, %42, %c0_i32_18 : i32
    scf.if %43 {
      %c0_19 = arith.constant 0 : index
      %c0_20 = arith.constant 0 : index
      %44 = vector.load %arg4[%c0_19, %c0_20] : memref<1x1xf32, #tpu.memory_space<vmem>>, vector<1x1xf32>
      %cst_21 = arith.constant 8.000000e+00 : f32
      %45 = vector.broadcast %cst_21 : f32 to vector<1x1xf32>
      %46 = arith.divf %44, %45 : vector<1x1xf32>
      %c0_22 = arith.constant 0 : index
      %c0_23 = arith.constant 0 : index
      %47 = vector.load %arg3[%c0_22, %c0_23] : memref<1x1xf32, #tpu.memory_space<vmem>>, vector<1x1xf32>
      tpu.vector_store %arg3[%c0_22, %c0_23], %46 {strides = array<i32>} : memref<1x1xf32, #tpu.memory_space<vmem>>, vector<1x1xf32>,
    } else {
    }
    return
  }
  func.func @transform_0(%arg0: i32) -> (i32, i32) {
    %c0_i32 = arith.constant 0 : i32
    %c0_i32_0 = arith.constant 0 : i32
    return %arg0, %c0_i32 : i32, i32
  }
  func.func @transform_1(%arg0: i32) -> (i32, i32) {
    %c0_i32 = arith.constant 0 : i32
    %c0_i32_0 = arith.constant 0 : i32
    return %arg0, %c0_i32 : i32, i32
  }
  func.func @transform_2(%arg0: i32) -> (i32, i32) {
    %c0_i32 = arith.constant 0 : i32
    %c0_i32_0 = arith.constant 0 : i32
    %c0_i32_1 = arith.constant 0 : i32
    return %c0_i32, %c0_i32_0 : i32, i32
  }
}

</mosaic_0001>

<bundles_post_ra>
// kernel: tpu_custom_call.1
= control target key start
LH: loop header
LB: loop body
LE: loop exit
PB: predicated region body
PF: predicated region fallthrough
CT: control target
= control target key end

     0   :  { %vm19_vm0 = vcmask 261120   ;;  %s151_s0 = inlined_call_operand.vmem [shape: f32[8,32], index: 0, kind: input, shape index: {}]   ;;  %s152_s1 = inlined_call_operand.vmem [shape: s32[8,1], index: 1, kind: input, shape index: {}]   ;;  %s153_s2 = inlined_call_operand.hbm [shape: f32[1,1], index: 2, kind: output, shape index: {}]  }
   0x1   :  { %v18_v0 = vld [vmem:[%s151_s0] sm:$0xff] }
   0x2   :  { %7 = vsyncpa [#allocation4], 0  ;;  %v20_v1 = vsel %vm19_vm0, %v18_v0, -inf  ;;  %v117_v2 = vmov 0   ;;  %v36_v3 = vld [vmem:[%s152_s1] sm:$0xff]  ;;  %v34_v7 = vlaneseq  ;;  %vm16_vm2 = vcmask 0  }
   0x3   :  { %90 = vset.pattern.permute.xlu0 %v117_v2  ;;  %v118_v15 = vmov 0.0   ;;  %s119_s0 = smov [#allocation3]  }
   0x4   :  { %21 = vmax.xlane.f32.xlu0 %v20_v1  ;;  %v35_v8 = vand.u32 127, %v34_v7  ;;  %17 = vst.msk [vmem:[#allocation2] sm:$0x1] %vm16_vm2, %v118_v15  ;;  %s79_s1 = sshll.u32 %s119_s0, 4  ;;  %s80_s1 = int_to_ptr.vmem [resolvable:$true] %s79_s1 }
   0x5   :  { %s95_s13 = scalar_lea.vmem %s80_s1, 16  ;;  %s99_s14 = scalar_lea.vmem %s80_s1, 32 }
   0x6   :  { %p96_p0 = scmp.ne.s32.totalorder %s80_s1, %s95_s13  ;;  %p100_p1 = scmp.lt.s32.totalorder %s80_s1, %s80_s1 }
   0x7   :  { %p101_p2 = scmp.lt.s32.totalorder %s99_s14, %s95_s13 }
   0x9   :  { %p102_p3 = por %p101_p2, %p100_p1 }
   0xb   :  { %v56_v30 = vld [vmem:[#allocation2] sm:$0x1]  ;;  %p103_p4 = pnand %p102_p3, %p96_p0 }
  0x1a   :  { %38 = vperm.xlu0 %90, %v36_v3  }
  0x8d   :  { %v22_v4 = vpop.xlane.xlu0 %21 }
  0x8e   :  { %v23_v5 = vsub.f32 %v18_v0, %v22_v4 }
  0x90   :  { %v24_v6 = vmul.f32 1.442695, %v23_v5  ;;  %v31_v14 = vsel %vm19_vm0, %v23_v5, 0.0 }
  0x92   :  { %91 = vpow2.f32 %v24_v6 }
  0x95   :  { %v39_v9 = vpop.permute.xlu0 %38 }
  0x96   :  { %vm40_vm1 = vcmp.eq.s32.totalorder %v35_v8, %v39_v9 }
  0x97   :  { %v41_v12 = vsel %vm40_vm1, %v23_v5, 0.0 }
  0x98   :  { %v42_v13 = vsel %vm19_vm0, %v41_v12, 0.0 }
  0x9f   :  { %v92_v10 = vpop.eup %91 }
  0xa0   :  { %v26_v11 = vsel %vm19_vm0, %v92_v10, 0.0 }
  0xa1   :  { %27 = vadd.xlane.f32.xlu1 %v26_v11 }
  0xa5   :  { %43 = vadd.xlane.f32.xlu1 %v42_v13 }
  0xa9   :  { %32 = vadd.xlane.f32.xlu1 %v31_v14 }
 0x12a   :  { %v28_v16 = vpop.xlane.xlu1 %27 }
 0x12b   :  { %93 = vlog2.f32 %v28_v16 }
 0x12e   :  { %v44_v17 = vpop.xlane.xlu1 %43 }
 0x12f   :  { %v45_v21 = vmul.f32 0.9, %v44_v17 }
 0x132   :  { %v33_v19 = vpop.xlane.xlu1 %32 }
 0x133   :  { %v47_v23 = vmul.f32 0.003125, %v33_v19 }
 0x138   :  { %v94_v18 = vpop.eup %93 }
 0x139   :  { %v30_v20 = vmul.f32 0.6931472, %v94_v18 }
 0x13b   :  { %v46_v22 = vsub.f32 %v30_v20, %v45_v21 }
 0x13d   :  { %v48_v24 = vsub.f32 %v46_v22, %v47_v23 }
 0x13f   :  { %v57_v25 = vrot.slane %v48_v24, 4 }
 0x141   :  { %v58_v26 = vadd.f32 %v57_v25, %v48_v24 }
 0x143   :  { %v59_v27 = vrot.slane %v58_v26, 2 }
 0x145   :  { %v60_v28 = vadd.f32 %v59_v27, %v58_v26 }
 0x147   :  { %v61_v29 = vrot.slane %v60_v28, 1 }
 0x149   :  { %v62_v31 = vadd.f32 %v61_v29, %v60_v28 }
 0x14b   :  { %v63_v32 = vadd.f32 %v62_v31, %v56_v30 }
 0x14d   :  { %65 = vst.msk [vmem:[#allocation2] sm:$0x1] %vm16_vm2, %v63_v32 }
 0x154   :  { %v69_v33 = vld [vmem:[#allocation2] sm:$0x1] }
 0x155   :  { %v71_v34 = vmul.f32 0.125, %v69_v33 }
 0x157   :  { %72 = vst.msk [vmem:[#allocation3] sm:$0x1] %vm16_vm2, %v71_v34 }
 0x158   :  { %106 = shalt.err (!%p103_p4)
}
 0x159   :  { %82 = dma.vmem_to_hbm [thread:$0]  %s80_s1, 16, %s153_s2, [#allocation4]  }
 0x15a   :  { %115 = dma.done.wait [#allocation4], 16  }
 0x15b   :  { %116 = vsyncadd [#allocation4], 4294967280 }
 0x15c   :  { %86 = vsyncpa [#allocation4], 1 }

</bundles_post_ra>
